<compile_context>
chip_gen: v7x
topology: tpu7x:2x2x1
jax: 0.10.0
libtpu: 0.0.40
codegen_flags: <defaults>
</compile_context>

<pallas_src>
import jax
import jax.numpy as jnp
from jax.experimental import pallas as pl
from jax.experimental.pallas import tpu as pltpu


LANES = 512            # default lane-dense width (multiple of 128)
MAX_TILE_ROWS = 2048   # 2048 x 512 f32 = 4 MiB/buffer (in+out double-buffered ~16 MiB)
VMEM_LIMIT_BYTES = 32 * 1024 * 1024

# dtype itemsize -> required second-to-last-dim (sublane) multiple
_SUBLANE_MULTIPLE = {4: 8, 2: 16, 1: 32}


def _round_up(a: int, m: int) -> int:
    return -(-a // m) * m


def linear_kernel(wb_ref, x_ref, o_ref):
    # wb_ref: (2,) float32 in SMEM -> [weight, bias], resident across the grid.
    w = wb_ref[0]
    b = wb_ref[1]
    # Pure VPU broadcast multiply-add on a lane-dense tile (no MXU: K == 1).
    o_ref[...] = (x_ref[...] * w + b).astype(o_ref.dtype)


def _scale_shift_2d(x2d, wb, tile_rows, lanes):
    rows = x2d.shape[0]
    grid = (pl.cdiv(rows, tile_rows),)   # partial final row block is masked by Pallas
    return pl.pallas_call(
        linear_kernel,
        out_shape=jax.ShapeDtypeStruct(x2d.shape, x2d.dtype),
        grid_spec=pltpu.PrefetchScalarGridSpec(
            num_scalar_prefetch=0,
            grid=grid,
            in_specs=[
                # (2,) weight/bias scalars live in SMEM (not a padded VMEM tile).
                pl.BlockSpec(memory_space=pltpu.MemorySpace.SMEM),
                # Streamed lane-dense data, auto double-buffered by BlockSpec.
                pl.BlockSpec((tile_rows, lanes), lambda i: (i, 0)),
            ],
            out_specs=pl.BlockSpec((tile_rows, lanes), lambda i: (i, 0)),
        ),
        compiler_params=pltpu.CompilerParams(
            # Independent row tiles: shard across v7x's two TensorCores
            # (harmless no-op on single-TC v5e/v6e).
            dimension_semantics=("parallel",),
            vmem_limit_bytes=VMEM_LIMIT_BYTES,
        ),
    )(wb, x2d)


def linear_regression_forward(x, weight, bias, *, lanes=LANES, max_tile_rows=MAX_TILE_ROWS):
    """Pallas equivalent of nn.Linear(1, 1)(x).

    x:      (N, 1)  float32 (bf16 also supported)
    weight: (1, 1)  float32  (PyTorch layout [out_features, in_features])
    bias:   (1,)    float32
    """
    N, in_features = x.shape
    assert in_features == 1, "LinearRegressionModel has in_features=1"
    dtype = x.dtype
    sublane = _SUBLANE_MULTIPLE.get(jnp.dtype(dtype).itemsize, 8)
    assert lanes % 128 == 0 and max_tile_rows % sublane == 0

    # Parameters stay float32 (SMEM) regardless of the activation dtype.
    w = jnp.asarray(weight, jnp.float32).reshape(())
    b = jnp.asarray(bias, jnp.float32).reshape(())
    wb = jnp.stack([w, b])  # (2,) float32

    flat = x.reshape(-1)    # zero-copy view of x
    total = N

    # Tiny-batch fast path: a single fused XLA elementwise beats the
    # pallas_call fixed cost (and any tail assembly) below one minimal tile.
    if total < lanes * sublane:
        return (flat.astype(jnp.float32) * w + b).astype(dtype).reshape(N, 1)

    # Prefer a lane width (multiple of 128) that divides N so the entire array
    # flows through the kernel with zero-copy reshapes and no tail / concat.
    for cand in (lanes, 512, 384, 256, 128):
        if cand % 128 == 0 and total % cand == 0:
            lanes = cand
            break

    main_total = (total // lanes) * lanes      # multiple-of-lanes prefix
    rows = main_total // lanes

    # Largest block within budget, but aim for >= 2 grid steps so both of
    # v7x's TensorCores get work on mid-size N.
    tile_rows = max(sublane, min(max_tile_rows, _round_up(pl.cdiv(rows, 2), sublane)))

    if main_total == total:
        x2d = flat.reshape(rows, lanes)                        # zero-copy
        y = _scale_shift_2d(x2d, wb, tile_rows, lanes)
        return y.reshape(N, 1)                                 # zero-copy

    # Ragged batch: kernel on the prefix, trivial jnp on the (< lanes) tail.
    x2d = flat[:main_total].reshape(rows, lanes)
    y_main = _scale_shift_2d(x2d, wb, tile_rows, lanes).reshape(-1)
    y_tail = (flat[main_total:].astype(jnp.float32) * w + b).astype(dtype)
    return jnp.concatenate([y_main, y_tail]).reshape(N, 1)


if __name__ == "__main__":
    key = jax.random.PRNGKey(0)
    kx, kw, kb, kx2, kx3 = jax.random.split(key, 5)

    # Deterministic parameters with nn.Linear(1, 1) shapes.
    weight = jax.random.uniform(kw, (1, 1), jnp.float32, -1.0, 1.0)
    bias = jax.random.uniform(kb, (1,), jnp.float32, -1.0, 1.0)

    def reference(xx):
        return xx @ weight.T + bias

    # 1) Tiny batch of 8 scalar samples -> fused-XLA fast path (no pallas_call).
    x = jax.random.normal(kx, (8, 1), jnp.float32)
    y = jax.block_until_ready(linear_regression_forward(x, weight, bias))
    assert y.shape == (8, 1)
    assert jnp.allclose(y, reference(x), atol=1e-5, rtol=1e-5), "mismatch (N=8)"

    # 2) Kernel path, N divisible by the default lane width: zero pad / slice /
    #    concat; 2-step parallel grid with a masked partial final row block.
    x3 = jax.random.normal(kx3, (12288, 1), jnp.float32)       # 24 rows of 512
    y3 = jax.block_until_ready(linear_regression_forward(x3, weight, bias))
    assert y3.shape == (12288, 1)
    assert jnp.allclose(y3, reference(x3), atol=1e-5, rtol=1e-5), "mismatch (N=12288)"

    # 3) Ragged batch (4099 is prime) with small tiles: multi-step pipelined
    #    grid (32 rows of 128 in blocks of 8) plus a 3-element jnp tail.
    x2 = jax.random.normal(kx2, (4099, 1), jnp.float32)
    y2 = jax.block_until_ready(
        linear_regression_forward(x2, weight, bias, lanes=128, max_tile_rows=8)
    )
    assert y2.shape == (4099, 1)
    assert jnp.allclose(y2, reference(x2), atol=1e-5, rtol=1e-5), "mismatch (N=4099)"

    print("KERNEL_OK")
</pallas_src>

<mosaic_0001>
module attributes {stable_mosaic.version = 11 : i64} {
  func.func @linear_kernel(%arg0: i32, %arg1: memref<2xf32, #tpu.memory_space<smem>>, %arg2: memref<16x512xf32, #tpu.memory_space<vmem>>, %arg3: memref<16x512xf32, #tpu.memory_space<vmem>>) attributes {dimension_semantics = [#tpu.dimension_semantics<parallel>], iteration_bounds = array<i64: 2>, scalar_prefetch = 0 : i64, scratch_operands = 0 : i64, tpu.core_type = #tpu.core_type<tc>, window_params = [{transform_indices = @transform_0, window_bounds = array<i64: 2>}, {transform_indices = @transform_1, window_bounds = array<i64: 16, 512>}, {transform_indices = @transform_2, window_bounds = array<i64: 16, 512>}]} {
    %c0 = arith.constant 0 : index
    %0 = memref.load %arg1[%c0] : memref<2xf32, #tpu.memory_space<smem>>
    %c1 = arith.constant 1 : index
    %1 = memref.load %arg1[%c1] : memref<2xf32, #tpu.memory_space<smem>>
    %c0_0 = arith.constant 0 : index
    %c0_1 = arith.constant 0 : index
    %2 = vector.load %arg2[%c0_0, %c0_1] : memref<16x512xf32, #tpu.memory_space<vmem>>, vector<16x512xf32>
    %3 = vector.broadcast %0 : f32 to vector<16x512xf32>
    %4 = arith.mulf %2, %3 : vector<16x512xf32>
    %5 = vector.broadcast %1 : f32 to vector<16x512xf32>
    %6 = arith.addf %4, %5 : vector<16x512xf32>
    %c0_2 = arith.constant 0 : index
    %c0_3 = arith.constant 0 : index
    %7 = vector.load %arg3[%c0_2, %c0_3] : memref<16x512xf32, #tpu.memory_space<vmem>>, vector<16x512xf32>
    tpu.vector_store %arg3[%c0_2, %c0_3], %6 {strides = array<i32>} : memref<16x512xf32, #tpu.memory_space<vmem>>, vector<16x512xf32>,
    return
  }
  func.func @transform_0(%arg0: i32) -> i32 {
    %c0_i32 = arith.constant 0 : i32
    %c0_i32_0 = arith.constant 0 : i32
    return %c0_i32 : i32
  }
  func.func @transform_1(%arg0: i32) -> (i32, i32) {
    %c0_i32 = arith.constant 0 : i32
    %c0_i32_0 = arith.constant 0 : i32
    return %arg0, %c0_i32 : i32, i32
  }
  func.func @transform_2(%arg0: i32) -> (i32, i32) {
    %c0_i32 = arith.constant 0 : i32
    %c0_i32_0 = arith.constant 0 : i32
    return %arg0, %c0_i32 : i32, i32
  }
}

</mosaic_0001>

<bundles_post_ra>
// kernel: tpu_custom_call.1
= control target key start
LH: loop header
LB: loop body
LE: loop exit
PB: predicated region body
PF: predicated region fallthrough
CT: control target
= control target key end

     0   :  { %7 = vsyncpa [#allocation5], 0  ;;  %s769_s0 = inlined_call_operand.hbm [shape: f32[2], index: 0, kind: input, shape index: {}]   ;;  %s770_s1 = inlined_call_operand.hbm [shape: f32[24,512], index: 1, kind: input, shape index: {}]   ;;  %s771_s2 = inlined_call_operand.hbm [shape: f32[24,512], index: 2, kind: output, shape index: {}]  }
   0x1   :  { %8 = vsyncpa [#allocation3], 0 }
   0x2   :  { %10 = vsyncpa [#allocation3 + $0x1], 0 }
   0x3   :  { %11 = vsyncpa [#allocation4], 0 }
   0x4   :  { %13 = vsyncpa [#allocation4 + $0x1], 0  ;;  %s561_s9 = smov 0   ;;  %s563_s10 = smov 0  }
   0x5   :  { %s565_s11 = smov 0   ;;  %s567_s12 = smov 0  }
   0x6 LB: > { %s582_s13 = sadd.s32 4294967295, %s537_s12   ;;  %s337_s14 = sadd.s32 4294967294, %s537_s12   ;;  %s537_s12 = sphi %s567_s12, %s787_s12   ;;  %s533_s11 = sphi %s565_s11, %s786_s11   ;;  %s529_s10 = sphi %s563_s10, %s785_s10   ;;  %s525_s9 = sphi %s561_s9, %s784_s9  }
   0x7   : > { %s586_s15 = sadd.s32 1, %s537_s12   ;;  %s47_s16 = sadd.s32 1, %s533_s11 }
   0x8   : > { %s44_s17 = ssub.s32 %s537_s12, %s586_s15  ;;  %p54_p0 = scmp.ne.s32.totalorder %s533_s11, %s529_s10 }
   0x9   : > { %p45_p1 = scmp.eq.s32.totalorder %s44_s17, 0  ;;  %p55_p2 = scmp.eq.s32.totalorder %s537_s12, 0 }
   0xa   : > { %p60_p3 = scmp.ne.s32.totalorder %s529_s10, %s525_s9  ;;  %p773_p4 = scmp.eq.s32.totalorder %s582_s13, 0 }
   0xb   : > { %s598_s18 = scalar_select %p45_p1, %s533_s11, %s47_s16  }
   0xc   : > { %p600_p5 = por %p55_p2, %p54_p0  ;;  %p606_p6 = por %p773_p4, %p60_p3 }
   0xd   : > { %p84_p7 = scmp.eq.s32.totalorder %s582_s13, 1  ;;  %p90_p8 = scmp.eq.s32.totalorder %s337_s14, 1 }
   0xe   : > { %p338_p9 = scmp.ge.s32.totalorder %s537_s12, 1  ;;  %p97_p10 = scmp.lt.s32.totalorder %s537_s12, 3 }
   0xf   : > { %p613_p11 = por %p84_p7, %p54_p0  ;;  %p617_p12 = por %p90_p8, %p60_p3 }
  0x10   : > { %p621_p13 = pnand %p338_p9, %p97_p10  ;;  %s426_s26 = scalar_lea.hbm %s769_s0, 16 }
  0x11   : > { %s776_s21 = scalar_select %p613_p11, 1, 0 }
  0x12   : > { %s777_s22 = scalar_select %p617_p12, 1, 0 }
  0x13   : > { %p378_p1 = pneg %p621_p13  ;;  %p427_p0 = scmp.ne.s32.totalorder %s769_s0, %s426_s26 }
  0x14   : > { %p433_p9 = scmp.lt.u32.totalorder %s426_s26, %s769_s0 }
  0x15   : > { %p379_p2 = pnand %p378_p1, %p773_p4 }
  0x17   : > { %p428_p3 = pneg %p379_p2 }
  0x19   : > { %p429_p7 = pnand %p428_p3, %p427_p0 }
  0x1b   : > { %p430_p8 = pneg %p429_p7 }
  0x1d   : > { %p435_p10 = pnand %p433_p9, %p430_p8 }
  0x1f   : > { %438 = shalt.err (!%p435_p10)
}
  0x20   : > { %s539_s3 = smov [#allocation2]   ;;  %p772_p1 = scmp.ge.s32.totalorder %s537_s12, 2 }
  0x21   : > { %381 = dma.hbm_to_smem (!%p379_p2), %s769_s0, 16, %s539_s3, [#allocation5]  }
  0x22   : > { %115 = sbr.rel (%p772_p1) target bundleno = 76 (0x4c), region = 20 }
  0x29   : > { %118 = sbr.rel (!%p600_p5) target bundleno = 76 (0x4c), region = 24  ;;  %s119_s6 = sand.u32 (%p600_p5), 1, %s533_s11  }
  0x2a   : > { %s342_s7 = sshll.u32 (%p600_p5), %s537_s12, 1  ;;  %s341_s8 = sshll.u32 (%p600_p5), %s119_s6, 6 }
  0x2b   : > { %s125_s14 = ssub.s32 (%p600_p5), 3, %s342_s7  ;;  %s651_s24 = scalar_lea.sflag (%p600_p5), [#allocation3], %s119_s6 }
  0x2c   : > { %p126_p0 = scmp.lt.s32.totalorder (%p600_p5), %s125_s14, 2  ;;  %s123_s25 = scalar_lea.vmem (%p600_p5), [#allocation6], %s341_s8 }
  0x30   : > { %s789_s14 = smov (!%p126_p0, %s125_s14), 2 }
  0x31   : > { %s648_s16 = sshll.u32 %s789_s14, 9 }
  0x32   : > { %s131_s17 = ssub.s32 1024, %s648_s16 }
  0x33   : > { %132 = vsyncadd %s651_s24, %s131_s17  ;;  %p345_p5 = scmp.ne.s32.totalorder %s648_s16, 0  ;;  %s368_s19 = sshll.u32 %s537_s12, 10 }
  0x34   : > { %s659_s28 = scalar_lea.hbm %s770_s1, %s368_s19  ;;  %s138_s29 = sshll.u32 %s123_s25, 4  ;;  %s661_s29 = int_to_ptr.vmem [resolvable:$true] %s138_s29 }
  0x35   : > { %s439_s30 = scalar_lea.hbm %s659_s28, %s648_s16  ;;  %s443_s5 = scalar_lea.hbm %s770_s1, 1536 }
  0x36   : > { %p440_p2 = scmp.ne.s32.totalorder %s659_s28, %s439_s30  ;;  %p444_p8 = scmp.lt.u32.totalorder %s659_s28, %s770_s1 }
  0x37   : > { %p445_p9 = scmp.lt.u32.totalorder %s443_s5, %s439_s30  ;;  %p447_p0 = scmp.lt.u32.totalorder %s439_s30, %s659_s28 }
  0x38   : > { %p441_p3 = pnand %p440_p2, %p345_p5 }
  0x39   : > { %p446_p10 = por %p445_p9, %p444_p8 }
  0x3a   : > { %p442_p7 = pneg %p441_p3 }
  0x3b   : > { %p448_p1 = por %p447_p0, %p446_p10 }
  0x3d   : > { %p449_p4 = pnand %p448_p1, %p442_p7 }
  0x3f   : > { %452 = shalt.err (!%p449_p4)
}
  0x40   : > { %s453_s8 = scalar_lea.vmem %s661_s29, %s648_s16  ;;  %s540_s14 = smov [#allocation6]  }
  0x41   : > { %p454_p2 = scmp.ne.s32.totalorder %s661_s29, %s453_s8  ;;  %s457_s17 = sshll.u32 %s540_s14, 4  ;;  %s458_s17 = int_to_ptr.vmem [resolvable:$false] %s457_s17 }
  0x42   : > { %s459_s25 = scalar_lea.vmem %s458_s17, 2048  ;;  %p460_p11 = scmp.lt.s32.totalorder %s661_s29, %s458_s17 }
  0x43   : > { %p455_p3 = pnand %p454_p2, %p345_p5  ;;  %p461_p8 = scmp.lt.s32.totalorder %s459_s25, %s453_s8 }
  0x45   : > { %p456_p12 = pneg %p455_p3  ;;  %p462_p9 = por %p461_p8, %p460_p11 }
  0x47   : > { %p463_p10 = pnand %p462_p9, %p456_p12 }
  0x49   : > { %466 = shalt.err (!%p463_p10)
}
  0x4a   : > { %s541_s19 = smov 512   ;;  %s542_s26 = smov 32  }
  0x4b   : > { %144 = dma.hbm_to_vmem [thread:$0]  (%p345_p5), %s659_s28, %s648_s16, %s661_s29, %s651_s24, %s541_s19, %s541_s19, %s542_s26  }
  0x4c PF: > { %150 = sbr.rel (%p621_p13) target bundleno = 133 (0x85), region = 28  ;;  %p779_p4 = scmp.eq.s32.totalorder (!%p621_p13), %s582_s13, 0 }
  0x53   : > { %512 = dma.done.wait (%p779_p4), [#allocation5], 16   ;;  %p780_p11 = pmov %p779_p4 }
  0x54   : > { %s695_s27 = sand.u32 1, %s529_s10  }
  0x55   : > { %514 = vsyncadd (%p780_p11), [#allocation5], 4294967280  ;;  %s352_s30 = sshll.u32 %s695_s27, 6  ;;  %s157_s16 = scalar_lea.sflag [#allocation3], %s695_s27 }
  0x56   : > { %s160_s24 = scalar_lea.vmem [#allocation6], %s352_s30 }
  0x57   : > { %516 = dma.done.wait (%p606_p6), %s157_s16, 1024  }
  0x58   : > { %518 = vsyncadd (%p606_p6), %s157_s16, 4294966272 }
  0x59   : > { %165 = sfence }
  0x5a   : > { %s194_s23 = sld [smem:[#allocation2]]  ;;  %s354_s28 = sld [smem:[#allocation2 + $0x1]]  ;;  %v196_v0 = vld [vmem:[%s160_s24] sm:$0xff]  ;;  %v197_v1 = vld [vmem:[%s160_s24 + $0x8] sm:$0xff]  ;;  %v198_v2 = vld [vmem:[%s160_s24 + $0x10] sm:$0xff] }
  0x5b   : > { %v199_v3 = vld [vmem:[%s160_s24 + $0x18] sm:$0xff]  ;;  %v200_v4 = vld [vmem:[%s160_s24 + $0x20] sm:$0xff]  ;;  %v201_v5 = vld [vmem:[%s160_s24 + $0x28] sm:$0xff]  ;;  %s181_s20 = scalar_lea.vmem [#allocation7], %s352_s30  ;;  %s231_s29 = scalar_lea.sflag [#allocation4], %s695_s27 }
  0x5c   : > { %v202_v6 = vld [vmem:[%s160_s24 + $0x30] sm:$0xff]  ;;  %v203_v8 = vld [vmem:[%s160_s24 + $0x38] sm:$0xff]  ;;  %p781_p6 = scmp.ne.s32.totalorder %s776_s21, 0 }
  0x5d   : > { %s356_s3 = sshll.u32 (%p781_p6), %s582_s13, 1 }
  0x5e   : > { %s239_s4 = ssub.s32 (%p781_p6), 3, %s356_s3 }
  0x5f   : > { %p240_p12 = scmp.lt.s32.totalorder (%p781_p6), %s239_s4, 2 }
  0x60   : > { %v204_v7 = vstv %s194_s23  ;;  %v213_v10 = vstv %s354_s28 }
  0x61   : > { %v205_v9 = vmul.f32 %v204_v7, %v196_v0  ;;  %v206_v11 = vmul.f32 %v204_v7, %v197_v1  ;;  %v207_v12 = vmul.f32 %v204_v7, %v198_v2  ;;  %v208_v13 = vmul.f32 %v204_v7, %v199_v3 }
  0x62   : > { %v209_v14 = vmul.f32 %v204_v7, %v200_v4  ;;  %v210_v15 = vmul.f32 %v204_v7, %v201_v5  ;;  %v211_v16 = vmul.f32 %v204_v7, %v202_v6  ;;  %v212_v20 = vmul.f32 %v204_v7, %v203_v8  ;;  %237 = sbr.rel (!%p781_p6) target bundleno = 133 (0x85), region = 40 }
  0x63   : > { %v214_v17 = vadd.f32 %v213_v10, %v205_v9  ;;  %v215_v18 = vadd.f32 %v213_v10, %v206_v11  ;;  %v216_v19 = vadd.f32 %v213_v10, %v207_v12  ;;  %v217_v21 = vadd.f32 %v213_v10, %v208_v13 }
  0x64   : > { %v218_v22 = vadd.f32 %v213_v10, %v209_v14  ;;  %v219_v23 = vadd.f32 %v213_v10, %v210_v15  ;;  %v220_v24 = vadd.f32 %v213_v10, %v211_v16  ;;  %v221_v25 = vadd.f32 %v213_v10, %v212_v20 }
  0x65   : > { %222 = vst [vmem:[%s181_s20] sm:$0xff] %v214_v17  ;;  %223 = vst [vmem:[%s181_s20 + $0x8] sm:$0xff] %v215_v18 }
  0x66   : > { %224 = vst [vmem:[%s181_s20 + $0x10] sm:$0xff] %v216_v19  ;;  %225 = vst [vmem:[%s181_s20 + $0x18] sm:$0xff] %v217_v21 }
  0x67   : > { %226 = vst [vmem:[%s181_s20 + $0x20] sm:$0xff] %v218_v22  ;;  %227 = vst [vmem:[%s181_s20 + $0x28] sm:$0xff] %v219_v23 }
  0x68   : > { %228 = vst [vmem:[%s181_s20 + $0x30] sm:$0xff] %v220_v24  ;;  %229 = vst [vmem:[%s181_s20 + $0x38] sm:$0xff] %v221_v25 }
  0x69   : > { %s791_s4 = smov (!%p240_p12, %s239_s4), 2 }
  0x6a   : > { %s711_s5 = sshll.u32 %s791_s4, 9 }
  0x6b   : > { %s245_s6 = ssub.s32 1024, %s711_s5 }
  0x6c   : > { %246 = vsyncadd %s231_s29, %s245_s6  ;;  %p359_p13 = scmp.ne.s32.totalorder %s711_s5, 0  ;;  %s371_s7 = sshll.u32 %s582_s13, 10 }
  0x6d   : > { %s721_s14 = scalar_lea.hbm %s771_s2, %s371_s7  ;;  %s252_s17 = sshll.u32 %s181_s20, 4  ;;  %s723_s17 = int_to_ptr.vmem [resolvable:$true] %s252_s17 }
  0x6e   : > { %s467_s25 = scalar_lea.vmem %s723_s17, %s711_s5  ;;  %s543_s19 = smov [#allocation7]  }
  0x6f   : > { %p468_p1 = scmp.ne.s32.totalorder %s723_s17, %s467_s25  ;;  %s471_s26 = sshll.u32 %s543_s19, 4  ;;  %s472_s26 = int_to_ptr.vmem [resolvable:$false] %s471_s26 }
  0x70   : > { %s473_s13 = scalar_lea.vmem %s472_s26, 2048  ;;  %p474_p0 = scmp.lt.s32.totalorder %s723_s17, %s472_s26 }
  0x71   : > { %p469_p5 = pnand %p468_p1, %p359_p13  ;;  %p475_p2 = scmp.lt.s32.totalorder %s473_s13, %s467_s25 }
  0x73   : > { %p470_p7 = pneg %p469_p5  ;;  %p476_p3 = por %p475_p2, %p474_p0 }
  0x75   : > { %p477_p8 = pnand %p476_p3, %p470_p7 }
  0x77   : > { %480 = shalt.err (!%p477_p8)
}
  0x78   : > { %s481_s30 = scalar_lea.hbm %s721_s14, %s711_s5  ;;  %s485_s23 = scalar_lea.hbm %s771_s2, 1536 }
  0x79   : > { %p482_p9 = scmp.ne.s32.totalorder %s721_s14, %s481_s30  ;;  %p486_p11 = scmp.lt.u32.totalorder %s721_s14, %s771_s2 }
  0x7a   : > { %p487_p6 = scmp.lt.u32.totalorder %s485_s23, %s481_s30  ;;  %p489_p1 = scmp.lt.u32.totalorder %s481_s30, %s721_s14 }
  0x7b   : > { %p483_p10 = pnand %p482_p9, %p359_p13 }
  0x7c   : > { %p488_p12 = por %p487_p6, %p486_p11 }
  0x7d   : > { %p484_p4 = pneg %p483_p10 }
  0x7e   : > { %p490_p5 = por %p489_p1, %p488_p12 }
  0x80   : > { %p491_p7 = pnand %p490_p5, %p484_p4 }
  0x82   : > { %494 = shalt.err (!%p491_p7)
}
  0x83   : > { %s544_s3 = smov 512   ;;  %s545_s4 = smov 32  }
  0x84   : > { %258 = dma.vmem_to_hbm [thread:$0]  (%p359_p13), %s723_s17, %s711_s5, %s721_s14, %s231_s29, %s544_s3, %s544_s3, %s545_s4  }
  0x85 PF: > { %s267_s6 = sand.u32 1, %s525_s9   ;;  %p782_p0 = scmp.ne.s32.totalorder %s777_s22, 0 }
  0x86   : > { %p783_p2 = scmp.ge.s32.totalorder %s537_s12, 2  ;;  %s268_s7 = scalar_lea.sflag [#allocation4], %s267_s6 }
  0x88   : > { %p383_p3 = pnand %p783_p2, %p782_p0 }
  0x8a   : > { %520 = dma.done.wait (!%p383_p3), %s268_s7, 1024  }
  0x8b   : > { %522 = vsyncadd (!%p383_p3), %s268_s7, 4294966272  ;;  %p16_p8 = scmp.ge.s32.totalorder %s586_s15, 4   ;;  %s784_s9 = smov %s529_s10 }
  0x8c   : > { %s785_s10 = smov %s533_s11  ;;  %s786_s11 = smov %s598_s18 }
  0x8d   : > { %s787_s12 = smov %s586_s15  ;;  %18 = sbr.rel (!%p16_p8) target bundleno = 6 (0x6), region = 78 }
  0x94   :  { %273 = vsyncpa [#allocation3], 1 }
  0x95   :  { %275 = vsyncpa [#allocation3 + $0x1], 1 }
  0x96   :  { %276 = vsyncpa [#allocation4], 1 }
  0x97   :  { %278 = vsyncpa [#allocation4 + $0x1], 1 }
  0x98   :  { %279 = vsyncpa [#allocation5], 1 }
  0x99   :  { %281 = vsyncpa [#allocation5 + $0x1], 1 }

</bundles_post_ra>
